<compile_context>
chip_gen: v5e
topology: v5e:2x2
jax: 0.10.0
libtpu: 0.0.40
codegen_flags: <defaults>
</compile_context>

<pallas_src>
import functools

import jax
import jax.numpy as jnp
from jax.experimental import pallas as pl
from jax.experimental.pallas import tpu as pltpu


def _fused_mlp_kernel(x_ref, *refs, num_layers: int, relu_flags, mxu_dtype):
    """Fused MLP, batch on the lane axis.

    refs = (w_0, b_0, w_1, b_1, ..., w_{L-1}, b_{L-1}, o_ref)
    x_ref: (n_in, tm); w_l: (n_out, n_in) (PyTorch orientation); b_l: (n_out, 1).
    """
    o_ref = refs[-1]
    h = x_ref[...]                                    # (n_in, tm)
    for layer in range(num_layers):
        w = refs[2 * layer][...]                      # (n_out, n_in)
        b = refs[2 * layer + 1][...]                  # (n_out, 1) -> broadcast over lanes
        lhs = w.astype(mxu_dtype) if mxu_dtype is not None else w
        rhs = h.astype(mxu_dtype) if mxu_dtype is not None else h
        h = jnp.dot(lhs, rhs, preferred_element_type=jnp.float32) + b
        if relu_flags[layer]:
            h = jnp.maximum(h, 0.0)
    o_ref[...] = h.astype(o_ref.dtype)


def _choose_batch_tile(B, batch_tile):
    """Pick the batch (lane-axis) tile size."""
    tm = min(batch_tile, B)
    if tm < B:
        # Tiled: keep the lane dim a multiple of 128 (unmasked full-width stores),
        # and prefer a tile that divides B exactly (no wrapper pad/slice passes).
        tm = max(128, (tm // 128) * 128)
        t = tm
        while t > 128 and B % t != 0:
            t -= 128
        if B % t == 0:
            tm = t
    elif B >= 256 and B % 256 == 0:
        # Whole batch would fit one tile: split in two so v7x's second TensorCore
        # gets work (negligible extra cost on v5e/v6e: one more cheap grid step).
        tm = B // 2
    return tm


def mlp_forward(x, params, *, batch_tile=512, mxu_dtype=None):
    """Run the full MLP in one Pallas TPU kernel.

    x:      (B, n_in) float32
    params: list of (w: (n_out, n_in), b: (n_out, 1), apply_relu: bool)
            (PyTorch nn.Linear orientation: y = x @ w.T + b)
    """
    B, n_in = x.shape
    num_layers = len(params)
    relu_flags = tuple(bool(p[2]) for p in params)
    out_features = params[-1][0].shape[0]

    tm = _choose_batch_tile(B, batch_tile)
    pad = (-B) % tm

    xt = x.T                                          # (n_in, B): batch on lanes
    if pad:                                           # fallback only when nothing divides B
        xt = jnp.pad(xt, ((0, 0), (0, pad)))
    Bp = B + pad
    grid = (Bp // tm,)

    in_specs = [pl.BlockSpec((n_in, tm), lambda i: (0, i))]
    flat_args = [xt]
    for w, b, _ in params:
        no, ni = w.shape
        # Weights/biases are tiny (a few KiB total): keep each fully VMEM-resident.
        in_specs.append(pl.BlockSpec((no, ni), lambda i: (0, 0)))
        in_specs.append(pl.BlockSpec((no, 1), lambda i: (0, 0)))
        flat_args.append(w)
        flat_args.append(b)

    out_t = pl.pallas_call(
        functools.partial(
            _fused_mlp_kernel,
            num_layers=num_layers,
            relu_flags=relu_flags,
            mxu_dtype=mxu_dtype,
        ),
        out_shape=jax.ShapeDtypeStruct((out_features, Bp), x.dtype),
        grid=grid,
        in_specs=in_specs,
        out_specs=pl.BlockSpec((out_features, tm), lambda i: (0, i)),
        compiler_params=pltpu.CompilerParams(
            dimension_semantics=("parallel",),
        ),
    )(*flat_args)

    if pad:
        out_t = out_t[:, :B]
    return out_t.T                                    # (B, out_features)


def init_mlp_params(key, in_features, out_features, hidden_units, bias=True):
    """Deterministic parameter init mirroring MLP.__init__ (seed branch), stored in
    PyTorch nn.Linear orientation: w (n_out, n_in), b (n_out, 1).
    Hidden: w ~ N(0, 1/sqrt(n_in)), b ~ N(1, 1); final layer synthetic init, no ReLU.
    """
    units = [in_features] + list(hidden_units)
    params = []
    for l in range(len(units) - 1):
        n_in, n_out = units[l], units[l + 1]
        key, kw, kb = jax.random.split(key, 3)
        w = jax.random.normal(kw, (n_out, n_in), jnp.float32) / jnp.sqrt(
            jnp.float32(n_in)
        )
        if bias:
            b = 1.0 + jax.random.normal(kb, (n_out, 1), jnp.float32)
        else:
            b = jnp.zeros((n_out, 1), jnp.float32)
        params.append((w, b, True))                   # True -> apply ReLU after
    # Final layer: nn.Linear(n_out_last, out_features), not activated.
    n_in = units[-1]
    key, kw, kb = jax.random.split(key, 3)
    w = jax.random.normal(kw, (out_features, n_in), jnp.float32) / jnp.sqrt(
        jnp.float32(n_in)
    )
    b = jax.random.normal(kb, (out_features, 1), jnp.float32) / jnp.sqrt(
        jnp.float32(n_in)
    )
    params.append((w, b, False))
    return params


def _reference(x, params):
    h = x
    for w, b, relu in params:
        h = jnp.dot(h, w.T, precision="highest") + b.reshape(1, -1)
        if relu:
            h = jnp.maximum(h, 0.0)
    return h


if __name__ == "__main__":
    key = jax.random.PRNGKey(0)
    kx, kp, kx2 = jax.random.split(key, 3)

    in_features, hidden_units, out_features = 16, [32, 32], 8
    params = init_mlp_params(kp, in_features, out_features, hidden_units, bias=True)

    # Small demo: whole batch in one tile, grid=(1,).
    x = jax.random.normal(kx, (8, in_features), jnp.float32)
    out = jax.block_until_ready(mlp_forward(x, params))
    ref = _reference(x, params)
    assert out.shape == (8, out_features)
    assert jnp.allclose(out, ref, atol=1e-3, rtol=1e-3), "f32 small-batch mismatch"

    # Lane-dense tiled path: B=256 -> two (., 128) lane-dense tiles on the
    # "parallel" grid axis (>=2 steps so both v7x TensorCores get work).
    x2 = jax.random.normal(kx2, (256, in_features), jnp.float32)
    out2 = jax.block_until_ready(mlp_forward(x2, params, batch_tile=512))
    ref2 = _reference(x2, params)
    assert out2.shape == (256, out_features)
    assert jnp.allclose(out2, ref2, atol=1e-3, rtol=1e-3), "f32 tiled mismatch"

    # bf16 MXU operands (f32 accumulate / bias / ReLU) -- looser tolerance.
    out3 = jax.block_until_ready(
        mlp_forward(x2, params, batch_tile=512, mxu_dtype=jnp.bfloat16)
    )
    assert out3.shape == (256, out_features)
    assert jnp.allclose(out3, ref2, atol=2.5e-1, rtol=5e-2), "bf16 mismatch"

    print("KERNEL_OK")
</pallas_src>

<mosaic_0001>
module attributes {stable_mosaic.version = 11 : i64} {
  func.func @_fused_mlp_kernel(%arg0: i32, %arg1: memref<16x8xf32, #tpu.memory_space<vmem>>, %arg2: memref<32x16xf32, #tpu.memory_space<vmem>>, %arg3: memref<32x1xf32, #tpu.memory_space<vmem>>, %arg4: memref<32x32xf32, #tpu.memory_space<vmem>>, %arg5: memref<32x1xf32, #tpu.memory_space<vmem>>, %arg6: memref<8x32xf32, #tpu.memory_space<vmem>>, %arg7: memref<8x1xf32, #tpu.memory_space<vmem>>, %arg8: memref<8x8xf32, #tpu.memory_space<vmem>>) attributes {dimension_semantics = [#tpu.dimension_semantics<parallel>], iteration_bounds = array<i64: 1>, scalar_prefetch = 0 : i64, scratch_operands = 0 : i64, tpu.core_type = #tpu.core_type<tc>, window_params = [{transform_indices = @transform_0, window_bounds = array<i64: 16, 8>}, {pipeline_mode = #tpu.pipeline_mode<synchronous>, transform_indices = @transform_1, window_bounds = array<i64: 32, 16>}, {pipeline_mode = #tpu.pipeline_mode<synchronous>, transform_indices = @transform_2, window_bounds = array<i64: 32, 1>}, {pipeline_mode = #tpu.pipeline_mode<synchronous>, transform_indices = @transform_3, window_bounds = array<i64: 32, 32>}, {pipeline_mode = #tpu.pipeline_mode<synchronous>, transform_indices = @transform_4, window_bounds = array<i64: 32, 1>}, {pipeline_mode = #tpu.pipeline_mode<synchronous>, transform_indices = @transform_5, window_bounds = array<i64: 8, 32>}, {pipeline_mode = #tpu.pipeline_mode<synchronous>, transform_indices = @transform_6, window_bounds = array<i64: 8, 1>}, {transform_indices = @transform_7, window_bounds = array<i64: 8, 8>}]} {
    %c0 = arith.constant 0 : index
    %c0_0 = arith.constant 0 : index
    %0 = vector.load %arg1[%c0, %c0_0] : memref<16x8xf32, #tpu.memory_space<vmem>>, vector<16x8xf32>
    %c0_1 = arith.constant 0 : index
    %c0_2 = arith.constant 0 : index
    %1 = vector.load %arg2[%c0_1, %c0_2] : memref<32x16xf32, #tpu.memory_space<vmem>>, vector<32x16xf32>
    %c0_3 = arith.constant 0 : index
    %c0_4 = arith.constant 0 : index
    %2 = vector.load %arg3[%c0_3, %c0_4] : memref<32x1xf32, #tpu.memory_space<vmem>>, vector<32x1xf32>
    %cst = arith.constant dense<0.000000e+00> : vector<32x8xf32>
    %3 = tpu.matmul %1, %0, %cst {dimension_numbers = #tpu.dot_dimension_numbers<[1], [0], [0], [1], [0, 0, 1, 1], [], []>} : vector<32x16xf32>, vector<16x8xf32>, vector<32x8xf32> -> vector<32x8xf32>
    %4 = vector.broadcast %2 : vector<32x1xf32> to vector<32x8xf32>
    %5 = arith.addf %3, %4 : vector<32x8xf32>
    %cst_5 = arith.constant 0.000000e+00 : f32
    %6 = vector.broadcast %cst_5 : f32 to vector<32x8xf32>
    %7 = arith.maximumf %5, %6 : vector<32x8xf32>
    %c0_6 = arith.constant 0 : index
    %c0_7 = arith.constant 0 : index
    %8 = vector.load %arg4[%c0_6, %c0_7] : memref<32x32xf32, #tpu.memory_space<vmem>>, vector<32x32xf32>
    %c0_8 = arith.constant 0 : index
    %c0_9 = arith.constant 0 : index
    %9 = vector.load %arg5[%c0_8, %c0_9] : memref<32x1xf32, #tpu.memory_space<vmem>>, vector<32x1xf32>
    %cst_10 = arith.constant dense<0.000000e+00> : vector<32x8xf32>
    %10 = tpu.matmul %8, %7, %cst_10 {dimension_numbers = #tpu.dot_dimension_numbers<[1], [0], [0], [1], [0, 0, 1, 1], [], []>} : vector<32x32xf32>, vector<32x8xf32>, vector<32x8xf32> -> vector<32x8xf32>
    %11 = vector.broadcast %9 : vector<32x1xf32> to vector<32x8xf32>
    %12 = arith.addf %10, %11 : vector<32x8xf32>
    %cst_11 = arith.constant 0.000000e+00 : f32
    %13 = vector.broadcast %cst_11 : f32 to vector<32x8xf32>
    %14 = arith.maximumf %12, %13 : vector<32x8xf32>
    %c0_12 = arith.constant 0 : index
    %c0_13 = arith.constant 0 : index
    %15 = vector.load %arg6[%c0_12, %c0_13] : memref<8x32xf32, #tpu.memory_space<vmem>>, vector<8x32xf32>
    %c0_14 = arith.constant 0 : index
    %c0_15 = arith.constant 0 : index
    %16 = vector.load %arg7[%c0_14, %c0_15] : memref<8x1xf32, #tpu.memory_space<vmem>>, vector<8x1xf32>
    %cst_16 = arith.constant dense<0.000000e+00> : vector<8x8xf32>
    %17 = tpu.matmul %15, %14, %cst_16 {dimension_numbers = #tpu.dot_dimension_numbers<[1], [0], [0], [1], [0, 0, 1, 1], [], []>} : vector<8x32xf32>, vector<32x8xf32>, vector<8x8xf32> -> vector<8x8xf32>
    %18 = vector.broadcast %16 : vector<8x1xf32> to vector<8x8xf32>
    %19 = arith.addf %17, %18 : vector<8x8xf32>
    %c0_17 = arith.constant 0 : index
    %c0_18 = arith.constant 0 : index
    %20 = vector.load %arg8[%c0_17, %c0_18] : memref<8x8xf32, #tpu.memory_space<vmem>>, vector<8x8xf32>
    tpu.vector_store %arg8[%c0_17, %c0_18], %19 {strides = array<i32>} : memref<8x8xf32, #tpu.memory_space<vmem>>, vector<8x8xf32>,
    return
  }
  func.func @transform_0(%arg0: i32) -> (i32, i32) {
    %c0_i32 = arith.constant 0 : i32
    %c0_i32_0 = arith.constant 0 : i32
    return %c0_i32, %arg0 : i32, i32
  }
  func.func @transform_1(%arg0: i32) -> (i32, i32) {
    %c0_i32 = arith.constant 0 : i32
    %c0_i32_0 = arith.constant 0 : i32
    %c0_i32_1 = arith.constant 0 : i32
    return %c0_i32, %c0_i32_0 : i32, i32
  }
  func.func @transform_2(%arg0: i32) -> (i32, i32) {
    %c0_i32 = arith.constant 0 : i32
    %c0_i32_0 = arith.constant 0 : i32
    %c0_i32_1 = arith.constant 0 : i32
    return %c0_i32, %c0_i32_0 : i32, i32
  }
  func.func @transform_3(%arg0: i32) -> (i32, i32) {
    %c0_i32 = arith.constant 0 : i32
    %c0_i32_0 = arith.constant 0 : i32
    %c0_i32_1 = arith.constant 0 : i32
    return %c0_i32, %c0_i32_0 : i32, i32
  }
  func.func @transform_4(%arg0: i32) -> (i32, i32) {
    %c0_i32 = arith.constant 0 : i32
    %c0_i32_0 = arith.constant 0 : i32
    %c0_i32_1 = arith.constant 0 : i32
    return %c0_i32, %c0_i32_0 : i32, i32
  }
  func.func @transform_5(%arg0: i32) -> (i32, i32) {
    %c0_i32 = arith.constant 0 : i32
    %c0_i32_0 = arith.constant 0 : i32
    %c0_i32_1 = arith.constant 0 : i32
    return %c0_i32, %c0_i32_0 : i32, i32
  }
  func.func @transform_6(%arg0: i32) -> (i32, i32) {
    %c0_i32 = arith.constant 0 : i32
    %c0_i32_0 = arith.constant 0 : i32
    %c0_i32_1 = arith.constant 0 : i32
    return %c0_i32, %c0_i32_0 : i32, i32
  }
  func.func @transform_7(%arg0: i32) -> (i32, i32) {
    %c0_i32 = arith.constant 0 : i32
    %c0_i32_0 = arith.constant 0 : i32
    return %c0_i32, %arg0 : i32, i32
  }
}

</mosaic_0001>

<bundles_post_ra>
// kernel: tpu_custom_call.1
= control target key start
LH: loop header
LB: loop body
LE: loop exit
PB: predicated region body
PF: predicated region fallthrough
CT: control target
= control target key end

     0   :  { %vm57_vm0 = vcmask 130048   ;;  %v275_v3 = vmov 0   ;;  %s389_s0 = inlined_call_operand.vmem [shape: f32[16,8], index: 0, kind: input, shape index: {}]   ;;  %s390_s1 = inlined_call_operand.vmem [shape: f32[32,16], index: 1, kind: input, shape index: {}]   ;;  %s391_s2 = inlined_call_operand.vmem [shape: f32[32,1], index: 2, kind: input, shape index: {}]   ;;  %s392_s3 = inlined_call_operand.vmem [shape: f32[32,32], index: 3, kind: input, shape index: {}]   ;;  %s393_s4 = inlined_call_operand.vmem [shape: f32[32,1], index: 4, kind: input, shape index: {}]   ;;  %s394_s5 = inlined_call_operand.vmem [shape: f32[8,32], index: 5, kind: input, shape index: {}]   ;;  %s395_s6 = inlined_call_operand.vmem [shape: f32[8,1], index: 6, kind: input, shape index: {}]   ;;  %s396_s7 = inlined_call_operand.hbm [shape: f32[8,8], index: 7, kind: output, shape index: {}]  }
   0x1   :  { %v28_v0 = vld [vmem:[%s389_s0 + $0x8] sm:$0xff]  ;;  %v27_v1 = vld [vmem:[%s389_s0] sm:$0xff]  ;;  %247 = vset.pattern.permute.xlu1 %v275_v3  ;;  %v36_v4 = vld [vmem:[%s391_s2 + $0x18] sm:$0xff]  ;;  %246 = vset.pattern.permute.xlu0 %v275_v3 }
   0x2   :  { %84 = vmatpush.msra.mxu0 %v28_v0  ;;  %v29_v2 = vld [vmem:[%s390_s1] sm:$0xff]  ;;  %v34_v5 = vld [vmem:[%s391_s2 + $0x8] sm:$0xff]  ;;  %54 = vperm.xlu0 %246, %v36_v4   ;;  %v32_v6 = vld [vmem:[%s390_s1 + $0x18] sm:$0xff] }
   0x3   :  { %44 = vperm.xlu1 %247, %v34_v5   ;;  %234 = vmatpush.msra.mxu1 %v28_v0 }
   0x4   :  { %85 = vmatpush.msra.mxu0 %v27_v1 }
   0x5   :  { %225 = vmatmul.msk.f32.vlgmr.msra.gmra.mxu0 %vm57_vm0, %v29_v2 }
   0x6   :  { %12 = vsyncpa [#allocation3], 0  ;;  %248 = vset.pattern.permute.xlu2 %v275_v3  ;;  %235 = vmatpush.msra.mxu1 %v27_v1  ;;  %v33_v7 = vld [vmem:[%s391_s2] sm:$0xff]  ;;  %v35_v8 = vld [vmem:[%s391_s2 + $0x10] sm:$0xff]  ;;  %vm131_vm1 = vcmask 261120   ;;  %s276_s11 = smov [#allocation2]  }
   0x7   :  { %228 = vmatmul.msk.f32.vlgmr.msra.gmra.mxu1 %vm57_vm0, %v32_v6  ;;  %v30_v9 = vld [vmem:[%s390_s1 + $0x8] sm:$0xff]  ;;  %v107_v10 = vld [vmem:[%s393_s4] sm:$0xff]  ;;  %v31_v12 = vld [vmem:[%s390_s1 + $0x10] sm:$0xff]  ;;  %s214_s12 = sshll.u32 %s276_s11, 4  ;;  %s216_s15 = sshll.u32 %s396_s7, 4  ;;  %vm207_vm2 = vcmask 64512   ;;  %s215_s12 = int_to_ptr.vmem [resolvable:$true] %s214_s12  ;;  %s217_s15 = int_to_ptr.hbm [resolvable:$true] %s216_s15 }
   0x8   :  { %v108_v11 = vld [vmem:[%s393_s4 + $0x8] sm:$0xff]  ;;  %v110_v16 = vld [vmem:[%s393_s4 + $0x18] sm:$0xff]  ;;  %v109_v21 = vld [vmem:[%s393_s4 + $0x10] sm:$0xff] }
   0x9   :  { %128 = vperm.xlu2 %248, %v110_v16   ;;  %v178_v27 = vld [vmem:[%s395_s6] sm:$0xff]  ;;  %v104_v33 = vld [vmem:[%s392_s3 + $0x8] sm:$0xff]  ;;  %v105_v34 = vld [vmem:[%s392_s3 + $0x10] sm:$0xff] }
   0xa   :  { %49 = vperm.xlu0 %246, %v35_v8   ;;  %v103_v32 = vld [vmem:[%s392_s3] sm:$0xff]  ;;  %v106_v35 = vld [vmem:[%s392_s3 + $0x18] sm:$0xff] }
   0xb   :  { %39 = vperm.xlu1 %247, %v33_v7   ;;  %v177_v52 = vld [vmem:[%s394_s5] sm:$0xff] }
   0xd   :  { %226 = vmatmul.msk.f32.gmra.mxu0 %vm57_vm0, %v30_v9 }
  0x11   :  { %123 = vperm.xlu2 %248, %v109_v21  }
  0x12   :  { %118 = vperm.xlu0 %246, %v108_v11  }
  0x13   :  { %113 = vperm.xlu1 %247, %v107_v10  }
  0x15   :  { %227 = vmatmul.msk.f32.gmra.mxu0 %vm57_vm0, %v31_v12 }
  0x19   :  { %181 = vperm.xlu2 %248, %v178_v27  }
  0x63   :  { %v129_v36 = vpop.permute.xlu2 %128 }
  0x6b   :  { %v124_v38 = vpop.permute.xlu2 %123 }
  0x73   :  { %v182_v53 = vpop.permute.xlu2 %181 }
  0x74   :  { %v55_v14 = vpop.permute.xlu0 %54 }
  0x75   :  { %v45_v18 = vpop.permute.xlu1 %44 }
  0x7c   :  { %v50_v23 = vpop.permute.xlu0 %49 }
  0x7d   :  { %v40_v22 = vpop.permute.xlu1 %39 }
  0x82   :  { %v87_v13 = vpop.f32.mrf.mxu0 }
  0x83   :  { %v88_v28 = vadd.f32 %v87_v13, %v40_v22 }
  0x84   :  { %v96_v15 = vpop.f32.mrf.mxu1  ;;  %v119_v43 = vpop.permute.xlu0 %118 }
  0x85   :  { %v97_v17 = vadd.f32 %v96_v15, %v55_v14  ;;  %v99_v31 = vmax.f32 %v88_v28, 0.0  ;;  %v114_v47 = vpop.permute.xlu1 %113 }
  0x87   :  { %v102_v19 = vmax.f32 %v97_v17, 0.0 }
  0x89   :  { %156 = vmatpush.msrb.mxu1 %v102_v19  ;;  %236 = vmatpush.msra.mxu2 %v102_v19 }
  0x8a   :  { %v90_v20 = vpop.f32.mrf.mxu0  ;;  %237 = vmatpush.msra.mxu3 %v102_v19 }
  0x8b   :  { %v91_v25 = vadd.f32 %v90_v20, %v45_v18 }
  0x8d   :  { %v100_v30 = vmax.f32 %v91_v25, 0.0 }
  0x92   :  { %v93_v24 = vpop.f32.mrf.mxu0 }
  0x93   :  { %v94_v26 = vadd.f32 %v93_v24, %v50_v23 }
  0x95   :  { %v101_v29 = vmax.f32 %v94_v26, 0.0 }
  0x97   :  { %157 = vmatpush.msrb.mxu1 %v101_v29  ;;  %238 = vmatpush.msra.mxu2 %v101_v29 }
  0x98   :  { %239 = vmatpush.msra.mxu3 %v101_v29 }
  0x99   :  { %158 = vmatpush.msrb.mxu1 %v100_v30  ;;  %240 = vmatpush.msra.mxu2 %v100_v30 }
  0x9a   :  { %241 = vmatpush.msra.mxu3 %v100_v30 }
  0x9b   :  { %159 = vmatpush.msrb.mxu1 %v99_v31  ;;  %242 = vmatpush.msra.mxu2 %v99_v31 }
  0x9c   :  { %243 = vmatpush.msra.mxu3 %v99_v31  ;;  %229 = vmatmul.msk.f32.vlgmr.msrb.gmra.mxu1 %vm131_vm1, %v103_v32 }
  0x9d   :  { %230 = vmatmul.msk.f32.vlgmr.msra.gmra.mxu2 %vm131_vm1, %v104_v33  ;;  %231 = vmatmul.msk.f32.vlgmr.msra.gmra.mxu3 %vm131_vm1, %v105_v34 }
  0xa5   :  { %232 = vmatmul.msk.f32.gmra.mxu3 %vm131_vm1, %v106_v35 }
 0x119   :  { %v161_v44 = vpop.f32.mrf.mxu1 }
 0x11a   :  { %v162_v48 = vadd.f32 %v161_v44, %v114_v47 }
 0x11c   :  { %v173_v51 = vmax.f32 %v162_v48, 0.0 }
 0x120   :  { %v167_v37 = vpop.f32.mrf.mxu3  ;;  %v164_v39 = vpop.f32.mrf.mxu2 }
 0x121   :  { %v168_v41 = vadd.f32 %v167_v37, %v124_v38  ;;  %v165_v45 = vadd.f32 %v164_v39, %v119_v43 }
 0x123   :  { %v175_v49 = vmax.f32 %v168_v41, 0.0  ;;  %v174_v50 = vmax.f32 %v165_v45, 0.0 }
 0x128   :  { %v170_v40 = vpop.f32.mrf.mxu3 }
 0x129   :  { %v171_v42 = vadd.f32 %v170_v40, %v129_v36 }
 0x12b   :  { %v176_v46 = vmax.f32 %v171_v42, 0.0 }
 0x12d   :  { %199 = vmatpush.msrb.mxu2 %v176_v46 }
 0x12f   :  { %200 = vmatpush.msrb.mxu2 %v175_v49 }
 0x131   :  { %201 = vmatpush.msrb.mxu2 %v174_v50 }
 0x133   :  { %202 = vmatpush.msrb.mxu2 %v173_v51 }
 0x134   :  { %233 = vmatmul.msk.f32.vlgmr.msrb.gmra.mxu2 %vm131_vm1, %v177_v52 }
 0x1b7   :  { %v204_v54 = vpop.f32.mrf.mxu2 }
 0x1b8   :  { %v205_v55 = vadd.f32 %v204_v54, %v182_v53 }
 0x1ba   :  { %208 = vst.msk [vmem:[#allocation2] sm:$0xff] %vm207_vm2, %v205_v55 }
 0x1bb   :  { %219 = dma.vmem_to_hbm [thread:$0]  %s215_s12, 128, %s217_s15, [#allocation3]  }
 0x1bc   :  { %273 = dma.done.wait [#allocation3], 128  }
 0x1bd   :  { %274 = vsyncadd [#allocation3], 4294967168 }
 0x1be   :  { %224 = vsyncpa [#allocation3], 1 }

</bundles_post_ra>
